<compile_context>
chip_gen: v7x
topology: tpu7x:2x2x1
jax: 0.10.0
libtpu: 0.0.40
codegen_flags: <defaults>
</compile_context>

<pallas_src>
import functools

import jax
import jax.numpy as jnp
from jax.experimental import pallas as pl
from jax.experimental.pallas import tpu as pltpu

# ---------------- problem sizes (small, consistent with the module) ----------
BATCH = 4
STATE_SIZE = 8
ACTION_SIZE = 2
LAYER_SIZE = 32          # params['layer_size']
N_CENTROIDS = 8          # params['num_points']
MAX_A = 1.0              # env.action_space.high[0]
BETA = 1.0               # params['temperature']
NORM_SMOOTHING = 0.01    # params['norm_smoothing']
# params['num_layers_action_side'] == 1  (no location_side1point5 layer)


def net_forward_kernel(s_ref, a_ref, w1_ref, w2_ref, w3_ref, w4_ref,
                       b_ref, g_ref, r_ref, out_ref):
    f32 = jnp.float32
    L, N = LAYER_SIZE, N_CENTROIDS
    NA = N_CENTROIDS * ACTION_SIZE

    sT = s_ref[...]                                     # (S, bb)  batch on lanes
    aT = a_ref[...]                                     # (A, bb)

    # packed bias column [b1 | b2 | b3 | b4]; segment offsets are 8-aligned.
    b = b_ref[...]                                      # (2L + L+NA + L + N, 1)
    b1 = b[0:2 * L, :]                                  # (64, 1)
    b2 = b[2 * L:3 * L + NA, :]                         # (48, 1)  offset 64
    b3 = b[3 * L + NA:4 * L + NA, :]                    # (32, 1)  offset 112
    b4 = b[4 * L + NA:, :]                              # (8, 1)   offset 144

    # ---- fused first layer (value side ‖ location side): ONE MXU pass -------
    h = jnp.maximum(
        jnp.dot(w1_ref[...], sT, preferred_element_type=f32) + b1, 0.0)  # (2L, bb)
    # TODO(synk): nn.Dropout is identity in eval mode; training-mode dropout not implemented.

    # ---- fused layer 2: block-diag [vw2ᵀ ⊕ lw2ᵀ] -----------------------------
    z = jnp.dot(w2_ref[...], h, preferred_element_type=f32) + b2         # (L+NA, bb)
    t = jnp.maximum(z[:L, :], 0.0)                                       # value side 2
    locs = MAX_A * jnp.tanh(z[L:, :])                                    # (NA, bb) centroids

    # ---- value side: layers 3..4 -> centroid values (N, bb) ------------------
    t = jnp.maximum(jnp.dot(w3_ref[...], t, preferred_element_type=f32) + b3, 0.0)
    values = jnp.dot(w4_ref[...], t, preferred_element_type=f32) + b4    # (N, bb)

    # ---- rbf_function(centroids, a): softmax over N of -beta*||c_n - a|| -----
    # replicate a per centroid with a tiny (NA, A) matmul (off the dependent
    # chain), keep the exact diff^2 formulation, group-sum over A with GT.
    a_rep = jnp.dot(r_ref[...], aT, preferred_element_type=f32)          # (NA, bb)
    diff = locs - a_rep
    sq = jnp.dot(g_ref[...], diff * diff, preferred_element_type=f32)    # (N, bb)
    logits = -BETA * jnp.sqrt(sq + NORM_SMOOTHING)
    m = jnp.max(logits, axis=0, keepdims=True)
    e = jnp.exp(logits - m)
    w = e * pl.reciprocal(jnp.sum(e, axis=0, keepdims=True), approx=True)

    # ---- output = sum_n w * values  -> lane-dense (1, bb) row ---------------
    out_ref[...] = jnp.sum(w * values, axis=0, keepdims=True)


def _round_up(x, m):
    return ((x + m - 1) // m) * m


@functools.partial(jax.jit, static_argnames=("block_b",))
def net_forward(s, a, packed, block_b=512):
    """s: (B, state_size), a: (B, action_size) -> Q(s, a): (B, 1)."""
    (w1T, w2_blk, w3T, w4T, b_all, GT, R) = packed
    B = s.shape[0]

    # Batch maps to the lane axis inside the kernel: transpose the (tiny)
    # activations here (layout plumbing, not compute).
    sT = s.T                                            # (S, B)
    aT = a.T                                            # (A, B)

    if B <= 128:
        bb = B                                          # single lane tile
    else:
        bb = max(128, (min(block_b, B) // 128) * 128)
        if _round_up(B, bb) // bb < 2:
            # v7x: keep the "parallel" batch axis at >= 2 grid steps so both
            # TensorCores get work (no effect on single-TC v5e/v6e).
            bb = _round_up((B + 1) // 2, 128)

    B_pad = _round_up(B, bb)
    if B_pad != B:
        sT = jnp.pad(sT, ((0, 0), (0, B_pad - B)))
        aT = jnp.pad(aT, ((0, 0), (0, B_pad - B)))

    grid = (B_pad // bb,)

    def lane_spec(rows):
        # batch-tiled arrays (s, a, out): tile along the lane axis.
        return pl.BlockSpec((rows, bb), lambda i: (0, i))

    def resident(arr):
        # weights: whole-array block at a constant index -> DMA'd once and
        # kept VMEM-resident across batch tiles (~30 KB total).
        return pl.BlockSpec(arr.shape, lambda i: (0, 0))

    out = pl.pallas_call(
        net_forward_kernel,
        out_shape=jax.ShapeDtypeStruct((1, B_pad), jnp.float32),
        grid=grid,
        in_specs=[
            lane_spec(STATE_SIZE),       # sT
            lane_spec(ACTION_SIZE),      # aT
            resident(w1T),               # fused first-layer weight (2L, S)
            resident(w2_blk),            # block-diag layer-2 weight (L+NA, 2L)
            resident(w3T),               # (L, L)
            resident(w4T),               # (N, L)
            resident(b_all),             # packed bias column
            resident(GT),                # group-sum matrix (N, NA)
            resident(R),                 # action-replication matrix (NA, A)
        ],
        out_specs=pl.BlockSpec((1, bb), lambda i: (0, i)),
        compiler_params=pltpu.CompilerParams(
            dimension_semantics=("parallel",)),
    )(sT, aT, w1T, w2_blk, w3T, w4T, b_all, GT, R)

    return out[:, :B].T                                  # (B, 1)


def init_params(key):
    """Deterministic parameter init mirroring the module's shapes (raw layout:
    weights [in, out], biases (1, out))."""
    ks = jax.random.split(key, 16)
    f32 = jnp.float32

    def uniform(k, shape, lo, hi):
        return jax.random.uniform(k, shape, dtype=f32, minval=lo, maxval=hi)

    def default_linear(kw, kb, fan_in, fan_out):
        # torch default: U(-1/sqrt(fan_in), 1/sqrt(fan_in))
        bound = 1.0 / jnp.sqrt(fan_in)
        return (uniform(kw, (fan_in, fan_out), -bound, bound),
                uniform(kb, (1, fan_out), -bound, bound))

    # value side
    vw1, vb1 = default_linear(ks[0], ks[1], STATE_SIZE, LAYER_SIZE)
    vw2, vb2 = default_linear(ks[2], ks[3], LAYER_SIZE, LAYER_SIZE)
    vw3, vb3 = default_linear(ks[4], ks[5], LAYER_SIZE, LAYER_SIZE)
    vw4, vb4 = default_linear(ks[6], ks[7], LAYER_SIZE, N_CENTROIDS)

    # location side 1: xavier uniform weight, zero bias
    xb = jnp.sqrt(6.0 / (STATE_SIZE + LAYER_SIZE))
    lw1 = uniform(ks[8], (STATE_SIZE, LAYER_SIZE), -xb, xb)
    lb1 = jnp.zeros((1, LAYER_SIZE), f32)

    # location side 2: N heads packed into one [layer, N*A] weight / [1, N*A] bias
    lw2 = uniform(ks[9], (LAYER_SIZE, N_CENTROIDS * ACTION_SIZE), -0.1, 0.1)
    lb2 = uniform(ks[10], (1, N_CENTROIDS * ACTION_SIZE), -1.0, 1.0)

    return (vw1, vb1, vw2, vb2, vw3, vb3, vw4, vb4, lw1, lb1, lw2, lb2)


def pack_params(raw):
    """Host-side packing: transpose everything to [out, in] (batch-on-lanes
    layout), fuse first-layer weights, build the block-diagonal layer-2 weight,
    pack biases into one 8-aligned column, build the group-sum / replicate
    matrices. Done once, outside the kernel call."""
    (vw1, vb1, vw2, vb2, vw3, vb3, vw4, vb4, lw1, lb1, lw2, lb2) = raw
    f32 = jnp.float32
    L, A = LAYER_SIZE, ACTION_SIZE
    N = N_CENTROIDS
    NA = N * A

    # fused first layer (value ‖ location), transposed
    w1T = jnp.concatenate([vw1, lw1], axis=1).T                 # (2L, S)
    b1 = jnp.concatenate([vb1, lb1], axis=1).T                  # (2L, 1)

    # block-diagonal layer 2: rows [0, L) value-side-2, rows [L, L+NA) location-side-2
    w2_blk = jnp.block([[vw2.T, jnp.zeros((L, L), f32)],
                        [jnp.zeros((NA, L), f32), lw2.T]])      # (L+NA, 2L)
    b2 = jnp.concatenate([vb2, lb2], axis=1).T                  # (L+NA, 1)

    w3T, b3 = vw3.T, vb3.T                                      # (L, L), (L, 1)
    w4T, b4 = vw4.T, vb4.T                                      # (N, L), (N, 1)

    # packed bias column; segment offsets 0 / 64 / 112 / 144 are all 8-aligned
    b_all = jnp.concatenate([b1, b2, b3, b4], axis=0)           # (152, 1)

    # group-sum (N, NA): sums A consecutive rows per centroid
    GT = (jnp.arange(N)[:, None] == (jnp.arange(NA)[None, :] // A)).astype(f32)
    # replicate (NA, A): stacks a per centroid
    R = ((jnp.arange(NA)[:, None] % A) == jnp.arange(A)[None, :]).astype(f32)
    return (w1T, w2_blk, w3T, w4T, b_all, GT, R)


def net_forward_reference(s, a, raw):
    """Plain-JAX reference of the PyTorch forward pass (correctness check)."""
    (vw1, vb1, vw2, vb2, vw3, vb3, vw4, vb4, lw1, lb1, lw2, lb2) = raw
    t = jax.nn.relu(s @ vw1 + vb1)
    t = jax.nn.relu(t @ vw2 + vb2)
    t = jax.nn.relu(t @ vw3 + vb3)
    values = t @ vw4 + vb4                                     # (B, N)
    l = jax.nn.relu(s @ lw1 + lb1)
    locs = MAX_A * jnp.tanh(l @ lw2 + lb2)                     # (B, N*A)
    locs = locs.reshape(s.shape[0], N_CENTROIDS, ACTION_SIZE)  # (B, N, A)
    diff = locs - a[:, None, :]
    dn = jnp.sqrt(jnp.sum(diff * diff, axis=2) + NORM_SMOOTHING)
    w = jax.nn.softmax(-BETA * dn, axis=1)
    return jnp.sum(w * values, axis=1, keepdims=True)


if __name__ == "__main__":
    key = jax.random.PRNGKey(0)
    k_s, k_a, k_p = jax.random.split(key, 3)
    raw = init_params(k_p)
    packed = pack_params(raw)

    # toy shape consistent with the module (single grid step)
    s = jax.random.normal(k_s, (BATCH, STATE_SIZE), dtype=jnp.float32)
    a = jax.random.uniform(k_a, (BATCH, ACTION_SIZE), dtype=jnp.float32,
                           minval=-MAX_A, maxval=MAX_A)
    out = jax.block_until_ready(net_forward(s, a, packed))
    ref = net_forward_reference(s, a, raw)
    assert out.shape == (BATCH, 1)
    # tolerance loosened slightly for pl.reciprocal(approx=True) on the softmax
    assert jnp.allclose(out, ref, atol=2e-3, rtol=2e-3), (out, ref)

    # larger batch: exercises lane tiling, padding and the >=2-step grid path
    B2 = 384
    k_s2, k_a2 = jax.random.split(jax.random.PRNGKey(1))
    s2 = jax.random.normal(k_s2, (B2, STATE_SIZE), dtype=jnp.float32)
    a2 = jax.random.uniform(k_a2, (B2, ACTION_SIZE), dtype=jnp.float32,
                            minval=-MAX_A, maxval=MAX_A)
    out2 = jax.block_until_ready(net_forward(s2, a2, packed))
    ref2 = net_forward_reference(s2, a2, raw)
    assert out2.shape == (B2, 1)
    assert jnp.allclose(out2, ref2, atol=2e-3, rtol=2e-3), \
        float(jnp.max(jnp.abs(out2 - ref2)))

    print("KERNEL_OK")
</pallas_src>

<mosaic_0001>
module attributes {stable_mosaic.version = 11 : i64} {
  func.func @net_forward_kernel(%arg0: i32, %arg1: memref<8x4xf32, #tpu.memory_space<vmem>>, %arg2: memref<2x4xf32, #tpu.memory_space<vmem>>, %arg3: memref<64x8xf32, #tpu.memory_space<vmem>>, %arg4: memref<48x64xf32, #tpu.memory_space<vmem>>, %arg5: memref<32x32xf32, #tpu.memory_space<vmem>>, %arg6: memref<8x32xf32, #tpu.memory_space<vmem>>, %arg7: memref<152x1xf32, #tpu.memory_space<vmem>>, %arg8: memref<8x16xf32, #tpu.memory_space<vmem>>, %arg9: memref<16x2xf32, #tpu.memory_space<vmem>>, %arg10: memref<1x4xf32, #tpu.memory_space<vmem>>) attributes {dimension_semantics = [#tpu.dimension_semantics<parallel>], iteration_bounds = array<i64: 1>, scalar_prefetch = 0 : i64, scratch_operands = 0 : i64, tpu.core_type = #tpu.core_type<tc>, window_params = [{transform_indices = @transform_0, window_bounds = array<i64: 8, 4>}, {transform_indices = @transform_1, window_bounds = array<i64: 2, 4>}, {pipeline_mode = #tpu.pipeline_mode<synchronous>, transform_indices = @transform_2, window_bounds = array<i64: 64, 8>}, {pipeline_mode = #tpu.pipeline_mode<synchronous>, transform_indices = @transform_3, window_bounds = array<i64: 48, 64>}, {pipeline_mode = #tpu.pipeline_mode<synchronous>, transform_indices = @transform_4, window_bounds = array<i64: 32, 32>}, {pipeline_mode = #tpu.pipeline_mode<synchronous>, transform_indices = @transform_5, window_bounds = array<i64: 8, 32>}, {pipeline_mode = #tpu.pipeline_mode<synchronous>, transform_indices = @transform_6, window_bounds = array<i64: 152, 1>}, {pipeline_mode = #tpu.pipeline_mode<synchronous>, transform_indices = @transform_7, window_bounds = array<i64: 8, 16>}, {pipeline_mode = #tpu.pipeline_mode<synchronous>, transform_indices = @transform_8, window_bounds = array<i64: 16, 2>}, {transform_indices = @transform_9, window_bounds = array<i64: 1, 4>}]} {
    %c0 = arith.constant 0 : index
    %c0_0 = arith.constant 0 : index
    %0 = vector.load %arg1[%c0, %c0_0] : memref<8x4xf32, #tpu.memory_space<vmem>>, vector<8x4xf32>
    %c0_1 = arith.constant 0 : index
    %c0_2 = arith.constant 0 : index
    %1 = vector.load %arg2[%c0_1, %c0_2] : memref<2x4xf32, #tpu.memory_space<vmem>>, vector<2x4xf32>
    %c0_3 = arith.constant 0 : index
    %c0_4 = arith.constant 0 : index
    %2 = vector.load %arg7[%c0_3, %c0_4] : memref<152x1xf32, #tpu.memory_space<vmem>>, vector<152x1xf32>
    %3 = vector.extract_strided_slice %2 {offsets = [0, 0], sizes = [64, 1], strides = [1, 1]} : vector<152x1xf32> to vector<64x1xf32>
    %4 = vector.extract_strided_slice %2 {offsets = [64, 0], sizes = [48, 1], strides = [1, 1]} : vector<152x1xf32> to vector<48x1xf32>
    %5 = vector.extract_strided_slice %2 {offsets = [112, 0], sizes = [32, 1], strides = [1, 1]} : vector<152x1xf32> to vector<32x1xf32>
    %6 = vector.extract_strided_slice %2 {offsets = [144, 0], sizes = [8, 1], strides = [1, 1]} : vector<152x1xf32> to vector<8x1xf32>
    %c0_5 = arith.constant 0 : index
    %c0_6 = arith.constant 0 : index
    %7 = vector.load %arg3[%c0_5, %c0_6] : memref<64x8xf32, #tpu.memory_space<vmem>>, vector<64x8xf32>
    %cst = arith.constant dense<0.000000e+00> : vector<64x4xf32>
    %8 = tpu.matmul %7, %0, %cst {dimension_numbers = #tpu.dot_dimension_numbers<[1], [0], [0], [1], [0, 0, 1, 1], [], []>} : vector<64x8xf32>, vector<8x4xf32>, vector<64x4xf32> -> vector<64x4xf32>
    %9 = vector.broadcast %3 : vector<64x1xf32> to vector<64x4xf32>
    %10 = arith.addf %8, %9 : vector<64x4xf32>
    %cst_7 = arith.constant 0.000000e+00 : f32
    %11 = vector.broadcast %cst_7 : f32 to vector<64x4xf32>
    %12 = arith.maximumf %10, %11 : vector<64x4xf32>
    %c0_8 = arith.constant 0 : index
    %c0_9 = arith.constant 0 : index
    %13 = vector.load %arg4[%c0_8, %c0_9] : memref<48x64xf32, #tpu.memory_space<vmem>>, vector<48x64xf32>
    %cst_10 = arith.constant dense<0.000000e+00> : vector<48x4xf32>
    %14 = tpu.matmul %13, %12, %cst_10 {dimension_numbers = #tpu.dot_dimension_numbers<[1], [0], [0], [1], [0, 0, 1, 1], [], []>} : vector<48x64xf32>, vector<64x4xf32>, vector<48x4xf32> -> vector<48x4xf32>
    %15 = vector.broadcast %4 : vector<48x1xf32> to vector<48x4xf32>
    %16 = arith.addf %14, %15 : vector<48x4xf32>
    %17 = vector.extract_strided_slice %16 {offsets = [0, 0], sizes = [32, 4], strides = [1, 1]} : vector<48x4xf32> to vector<32x4xf32>
    %cst_11 = arith.constant 0.000000e+00 : f32
    %18 = vector.broadcast %cst_11 : f32 to vector<32x4xf32>
    %19 = arith.maximumf %17, %18 : vector<32x4xf32>
    %20 = vector.extract_strided_slice %16 {offsets = [32, 0], sizes = [16, 4], strides = [1, 1]} : vector<48x4xf32> to vector<16x4xf32>
    %21 = math.tanh %20 : vector<16x4xf32>
    %cst_12 = arith.constant 1.000000e+00 : f32
    %22 = vector.broadcast %cst_12 : f32 to vector<16x4xf32>
    %23 = arith.mulf %22, %21 : vector<16x4xf32>
    %c0_13 = arith.constant 0 : index
    %c0_14 = arith.constant 0 : index
    %24 = vector.load %arg5[%c0_13, %c0_14] : memref<32x32xf32, #tpu.memory_space<vmem>>, vector<32x32xf32>
    %cst_15 = arith.constant dense<0.000000e+00> : vector<32x4xf32>
    %25 = tpu.matmul %24, %19, %cst_15 {dimension_numbers = #tpu.dot_dimension_numbers<[1], [0], [0], [1], [0, 0, 1, 1], [], []>} : vector<32x32xf32>, vector<32x4xf32>, vector<32x4xf32> -> vector<32x4xf32>
    %26 = vector.broadcast %5 : vector<32x1xf32> to vector<32x4xf32>
    %27 = arith.addf %25, %26 : vector<32x4xf32>
    %cst_16 = arith.constant 0.000000e+00 : f32
    %28 = vector.broadcast %cst_16 : f32 to vector<32x4xf32>
    %29 = arith.maximumf %27, %28 : vector<32x4xf32>
    %c0_17 = arith.constant 0 : index
    %c0_18 = arith.constant 0 : index
    %30 = vector.load %arg6[%c0_17, %c0_18] : memref<8x32xf32, #tpu.memory_space<vmem>>, vector<8x32xf32>
    %cst_19 = arith.constant dense<0.000000e+00> : vector<8x4xf32>
    %31 = tpu.matmul %30, %29, %cst_19 {dimension_numbers = #tpu.dot_dimension_numbers<[1], [0], [0], [1], [0, 0, 1, 1], [], []>} : vector<8x32xf32>, vector<32x4xf32>, vector<8x4xf32> -> vector<8x4xf32>
    %32 = vector.broadcast %6 : vector<8x1xf32> to vector<8x4xf32>
    %33 = arith.addf %31, %32 : vector<8x4xf32>
    %c0_20 = arith.constant 0 : index
    %c0_21 = arith.constant 0 : index
    %34 = vector.load %arg9[%c0_20, %c0_21] : memref<16x2xf32, #tpu.memory_space<vmem>>, vector<16x2xf32>
    %cst_22 = arith.constant dense<0.000000e+00> : vector<16x4xf32>
    %35 = tpu.matmul %34, %1, %cst_22 {dimension_numbers = #tpu.dot_dimension_numbers<[1], [0], [0], [1], [0, 0, 1, 1], [], []>} : vector<16x2xf32>, vector<2x4xf32>, vector<16x4xf32> -> vector<16x4xf32>
    %36 = arith.subf %23, %35 : vector<16x4xf32>
    %c0_23 = arith.constant 0 : index
    %c0_24 = arith.constant 0 : index
    %37 = vector.load %arg8[%c0_23, %c0_24] : memref<8x16xf32, #tpu.memory_space<vmem>>, vector<8x16xf32>
    %38 = arith.mulf %36, %36 : vector<16x4xf32>
    %cst_25 = arith.constant dense<0.000000e+00> : vector<8x4xf32>
    %39 = tpu.matmul %37, %38, %cst_25 {dimension_numbers = #tpu.dot_dimension_numbers<[1], [0], [0], [1], [0, 0, 1, 1], [], []>} : vector<8x16xf32>, vector<16x4xf32>, vector<8x4xf32> -> vector<8x4xf32>
    %cst_26 = arith.constant 0.00999999977 : f32
    %40 = vector.broadcast %cst_26 : f32 to vector<8x4xf32>
    %41 = arith.addf %39, %40 : vector<8x4xf32>
    %42 = math.sqrt %41 : vector<8x4xf32>
    %cst_27 = arith.constant -1.000000e+00 : f32
    %43 = vector.broadcast %cst_27 : f32 to vector<8x4xf32>
    %44 = arith.mulf %43, %42 : vector<8x4xf32>
    %cst_28 = arith.constant dense<0xFF800000> : vector<4xf32>
    %45 = vector.multi_reduction <maximumf>, %44, %cst_28 [0] : vector<8x4xf32> to vector<4xf32>
    %46 = vector.shape_cast %45 : vector<4xf32> to vector<1x4xf32>
    %47 = vector.broadcast %46 : vector<1x4xf32> to vector<8x4xf32>
    %48 = arith.subf %44, %47 : vector<8x4xf32>
    %49 = math.exp %48 : vector<8x4xf32>
    %cst_29 = arith.constant dense<0.000000e+00> : vector<4xf32>
    %50 = vector.multi_reduction <add>, %49, %cst_29 [0] : vector<8x4xf32> to vector<4xf32>
    %51 = vector.shape_cast %50 : vector<4xf32> to vector<1x4xf32>
    %52 = tpu.reciprocal %51 {approx = true} : vector<1x4xf32> -> vector<1x4xf32>
    %53 = vector.broadcast %52 : vector<1x4xf32> to vector<8x4xf32>
    %54 = arith.mulf %49, %53 : vector<8x4xf32>
    %55 = arith.mulf %54, %33 : vector<8x4xf32>
    %cst_30 = arith.constant dense<0.000000e+00> : vector<4xf32>
    %56 = vector.multi_reduction <add>, %55, %cst_30 [0] : vector<8x4xf32> to vector<4xf32>
    %57 = vector.shape_cast %56 : vector<4xf32> to vector<1x4xf32>
    %c0_31 = arith.constant 0 : index
    %c0_32 = arith.constant 0 : index
    %58 = vector.load %arg10[%c0_31, %c0_32] : memref<1x4xf32, #tpu.memory_space<vmem>>, vector<1x4xf32>
    tpu.vector_store %arg10[%c0_31, %c0_32], %57 {strides = array<i32>} : memref<1x4xf32, #tpu.memory_space<vmem>>, vector<1x4xf32>,
    return
  }
  func.func @transform_0(%arg0: i32) -> (i32, i32) {
    %c0_i32 = arith.constant 0 : i32
    %c0_i32_0 = arith.constant 0 : i32
    return %c0_i32, %arg0 : i32, i32
  }
  func.func @transform_1(%arg0: i32) -> (i32, i32) {
    %c0_i32 = arith.constant 0 : i32
    %c0_i32_0 = arith.constant 0 : i32
    return %c0_i32, %arg0 : i32, i32
  }
  func.func @transform_2(%arg0: i32) -> (i32, i32) {
    %c0_i32 = arith.constant 0 : i32
    %c0_i32_0 = arith.constant 0 : i32
    %c0_i32_1 = arith.constant 0 : i32
    return %c0_i32, %c0_i32_0 : i32, i32
  }
  func.func @transform_3(%arg0: i32) -> (i32, i32) {
    %c0_i32 = arith.constant 0 : i32
    %c0_i32_0 = arith.constant 0 : i32
    %c0_i32_1 = arith.constant 0 : i32
    return %c0_i32, %c0_i32_0 : i32, i32
  }
  func.func @transform_4(%arg0: i32) -> (i32, i32) {
    %c0_i32 = arith.constant 0 : i32
    %c0_i32_0 = arith.constant 0 : i32
    %c0_i32_1 = arith.constant 0 : i32
    return %c0_i32, %c0_i32_0 : i32, i32
  }
  func.func @transform_5(%arg0: i32) -> (i32, i32) {
    %c0_i32 = arith.constant 0 : i32
    %c0_i32_0 = arith.constant 0 : i32
    %c0_i32_1 = arith.constant 0 : i32
    return %c0_i32, %c0_i32_0 : i32, i32
  }
  func.func @transform_6(%arg0: i32) -> (i32, i32) {
    %c0_i32 = arith.constant 0 : i32
    %c0_i32_0 = arith.constant 0 : i32
    %c0_i32_1 = arith.constant 0 : i32
    return %c0_i32, %c0_i32_0 : i32, i32
  }
  func.func @transform_7(%arg0: i32) -> (i32, i32) {
    %c0_i32 = arith.constant 0 : i32
    %c0_i32_0 = arith.constant 0 : i32
    %c0_i32_1 = arith.constant 0 : i32
    return %c0_i32, %c0_i32_0 : i32, i32
  }
  func.func @transform_8(%arg0: i32) -> (i32, i32) {
    %c0_i32 = arith.constant 0 : i32
    %c0_i32_0 = arith.constant 0 : i32
    %c0_i32_1 = arith.constant 0 : i32
    return %c0_i32, %c0_i32_0 : i32, i32
  }
  func.func @transform_9(%arg0: i32) -> (i32, i32) {
    %c0_i32 = arith.constant 0 : i32
    %c0_i32_0 = arith.constant 0 : i32
    return %c0_i32, %arg0 : i32, i32
  }
}

</mosaic_0001>

<bundles_post_ra>
// kernel: net_forward.1
= control target key start
LH: loop header
LB: loop body
LE: loop exit
PB: predicated region body
PF: predicated region fallthrough
CT: control target
= control target key end

     0   :  { %vm102_vm0 = vcmask 64512   ;;  %v1035_v4 = vmov 0   ;;  %s1255_s0 = inlined_call_operand.vmem [shape: f32[8,4], index: 0, kind: input, shape index: {}]   ;;  %s1256_s1 = inlined_call_operand.vmem [shape: f32[2,4], index: 1, kind: input, shape index: {}]   ;;  %s1257_s2 = inlined_call_operand.vmem [shape: f32[64,8], index: 2, kind: input, shape index: {}]   ;;  %s1258_s3 = inlined_call_operand.vmem [shape: f32[48,64], index: 3, kind: input, shape index: {}]   ;;  %s1259_s4 = inlined_call_operand.vmem [shape: f32[32,32], index: 4, kind: input, shape index: {}]   ;;  %s1260_s5 = inlined_call_operand.vmem [shape: f32[8,32], index: 5, kind: input, shape index: {}]   ;;  %s1261_s6 = inlined_call_operand.vmem [shape: f32[152,1], index: 6, kind: input, shape index: {}]   ;;  %s1262_s7 = inlined_call_operand.vmem [shape: f32[8,16], index: 7, kind: input, shape index: {}]   ;;  %s1263_s8 = inlined_call_operand.vmem [shape: f32[16,2], index: 8, kind: input, shape index: {}]   ;;  %s1264_s9 = inlined_call_operand.hbm [shape: f32[1,4], index: 9, kind: output, shape index: {}]  }
   0x1   :  { %v33_v0 = vld [vmem:[%s1255_s0] sm:$0xff]  ;;  %v55_v2 = vld [vmem:[%s1257_s2 + $0x8] sm:$0xff]  ;;  %v56_v3 = vld [vmem:[%s1257_s2 + $0x10] sm:$0xff]  ;;  %999 = vset.pattern.permute.xlu0 %v1035_v4  ;;  %1000 = vset.pattern.permute.xlu1 %v1035_v4 }
   0x2   :  { %v54_v1 = vld [vmem:[%s1257_s2] sm:$0xff]  ;;  %885 = vmatprep.subr.mxu0 %v33_v0  ;;  %v37_v6 = vld [vmem:[%s1261_s6 + $0x10] sm:$0xff]  ;;  %v57_v7 = vld [vmem:[%s1257_s2 + $0x18] sm:$0xff] }
   0x3   :  { %887 = vmatprep.mubr.msk.f32.mxu0 %vm102_vm0, %v54_v1  ;;  %886 = vmatpush3.msra.mxu0 %v33_v0  ;;  %v35_v5 = vld [vmem:[%s1261_s6] sm:$0xff]  ;;  %v36_v9 = vld [vmem:[%s1261_s6 + $0x8] sm:$0xff]  ;;  %v38_v10 = vld [vmem:[%s1261_s6 + $0x18] sm:$0xff] }
   0x4   :  { %888 = vmatmul.mubr.msk.f32.vlgmr.msra.gmra.mrb[0].mxu0 %vm102_vm0, %v55_v2  ;;  %64 = vperm.xlu0 %999, %v35_v5   ;;  %v58_v8 = vld [vmem:[%s1257_s2 + $0x20] sm:$0xff]  ;;  %v59_v11 = vld [vmem:[%s1257_s2 + $0x28] sm:$0xff]  ;;  %v60_v12 = vld [vmem:[%s1257_s2 + $0x30] sm:$0xff] }
   0x5   :  { %890 = vmatprep.mubr.msk.f32.mxu0 %vm102_vm0, %v56_v3  ;;  %74 = vperm.xlu1 %1000, %v37_v6   ;;  %v39_v13 = vld [vmem:[%s1261_s6 + $0x20] sm:$0xff] }
   0x8   :  { %891 = vmatmul.mubr.msk.f32.gmra.mrb[2].mxu0 %vm102_vm0, %v57_v7  ;;  %69 = vperm.xlu0 %999, %v36_v9  }
   0x9   :  { %893 = vmatprep.mubr.msk.f32.mxu0 %vm102_vm0, %v58_v8  ;;  %79 = vperm.xlu1 %1000, %v38_v10  }
   0xa   :  { %14 = vsyncpa [#allocation3], 0  ;;  %v40_v14 = vld [vmem:[%s1261_s6 + $0x28] sm:$0xff]  ;;  %v61_v15 = vld [vmem:[%s1257_s2 + $0x38] sm:$0xff]  ;;  %vm276_vm1 = vcmask 523264   ;;  %vm610_vm2 = vcmask 1041408  }
   0xb   :  { %v41_v16 = vld [vmem:[%s1261_s6 + $0x30] sm:$0xff]  ;;  %v42_v17 = vld [vmem:[%s1261_s6 + $0x38] sm:$0xff]  ;;  %v43_v18 = vld [vmem:[%s1261_s6 + $0x40] sm:$0xff]  ;;  %vm603_vm3 = vcmask 15360   ;;  %vm420_vm4 = vcmask 261120   ;;  %vm1037_vm5 = vmmov 0  }
   0xc   :  { %894 = vmatmul.mubr.msk.f32.gmra.mrb[4].mxu0 %vm102_vm0, %v59_v11  ;;  %84 = vperm.xlu0 %999, %v39_v13   ;;  %v44_v19 = vld [vmem:[%s1261_s6 + $0x48] sm:$0xff]  ;;  %v45_v20 = vld [vmem:[%s1261_s6 + $0x50] sm:$0xff]  ;;  %v46_v21 = vld [vmem:[%s1261_s6 + $0x58] sm:$0xff]  ;;  %vm694_vm6 = vcmask 130048   ;;  %vm776_vm9 = vcmask 31744   ;;  %vm804_vm10 = vcmask 24576  }
   0xd   :  { %896 = vmatprep.mubr.msk.f32.mxu0 %vm102_vm0, %v60_v12  ;;  %89 = vperm.xlu1 %1000, %v40_v14   ;;  %v47_v22 = vld [vmem:[%s1261_s6 + $0x60] sm:$0xff]  ;;  %v48_v23 = vld [vmem:[%s1261_s6 + $0x68] sm:$0xff]  ;;  %v49_v24 = vld [vmem:[%s1261_s6 + $0x70] sm:$0xff] }
   0xe   :  { %v50_v25 = vld [vmem:[%s1261_s6 + $0x78] sm:$0xff]  ;;  %v51_v26 = vld [vmem:[%s1261_s6 + $0x80] sm:$0xff]  ;;  %v52_v27 = vld [vmem:[%s1261_s6 + $0x88] sm:$0xff] }
   0xf   :  { %v53_v28 = vld [vmem:[%s1261_s6 + $0x90] sm:$0xff]  ;;  %v240_v29 = vld [vmem:[%s1258_s3] sm:$0xff]  ;;  %v241_v3 = vld [vmem:[%s1258_s3 + $0x8] sm:$0xff] }
  0x10   :  { %897 = vmatmul.mubr.msk.f32.gmra.mrb[6].mxu0 %vm102_vm0, %v61_v15  ;;  %94 = vperm.xlu0 %999, %v41_v16   ;;  %v34_v2 = vld [vmem:[%s1256_s1] sm:$0x3]  ;;  %v242_v4 = vld [vmem:[%s1258_s3 + $0x10] sm:$0xff]  ;;  %v243_v5 = vld [vmem:[%s1258_s3 + $0x18] sm:$0xff] }
  0x11   :  { %99 = vperm.xlu1 %1000, %v42_v17   ;;  %915 = vmatprep.mubr.msk.f32.mxu1 %vm276_vm1, %v240_v29  ;;  %v244_v6 = vld [vmem:[%s1258_s3 + $0x20] sm:$0xff]  ;;  %v245_v7 = vld [vmem:[%s1258_s3 + $0x28] sm:$0xff] }
  0x12   :  { %v601_v8 = vld [vmem:[%s1263_s8] sm:$0xff]  ;;  %v602_v9 = vld [vmem:[%s1263_s8 + $0x8] sm:$0xff] }
  0x13   :  { %v396_v10 = vld [vmem:[%s1259_s4] sm:$0xff] }
  0x14   :  { %248 = vperm.xlu0 %999, %v43_v18   ;;  %932 = vmatprep.mubr.msk.f32.mxu0 %vm420_vm4, %v396_v10 }
  0x15   :  { %253 = vperm.xlu1 %1000, %v44_v19  }
  0x18   :  { %258 = vperm.xlu0 %999, %v45_v20  }
  0x19   :  { %263 = vperm.xlu1 %1000, %v46_v21  }
  0x1c   :  { %268 = vperm.xlu0 %999, %v47_v22  }
  0x1d   :  { %273 = vperm.xlu1 %1000, %v48_v23  }
  0x20   :  { %402 = vperm.xlu0 %999, %v49_v24  }
  0x21   :  { %407 = vperm.xlu1 %1000, %v50_v25  }
  0x24   :  { %412 = vperm.xlu0 %999, %v51_v26  }
  0x25   :  { %417 = vperm.xlu1 %1000, %v52_v27  }
  0x28   :  { %525 = vperm.xlu0 %999, %v53_v28  }
  0x83   :  { %v65_v30 = vpop.permute.xlu0 %64 }
  0x84   :  { %v75_v31 = vpop.permute.xlu1 %74 }
  0x87   :  { %v70_v32 = vpop.permute.xlu0 %69 }
  0x88   :  { %v80_v33 = vpop.permute.xlu1 %79 }
  0x8b   :  { %v85_v46 = vpop.permute.xlu0 %84 }
  0x8c   :  { %v90_v43 = vpop.permute.xlu1 %89 }
  0x8f   :  { %v95_v58 = vpop.permute.xlu0 %94 }
  0x90   :  { %v100_v55 = vpop.permute.xlu1 %99 }
  0x93   :  { %v249_v12 = vpop.permute.xlu0 %248 }
  0x94   :  { %v254_v11 = vpop.permute.xlu1 %253 }
  0x97   :  { %v259_v18 = vpop.permute.xlu0 %258 }
  0x98   :  { %v264_v16 = vpop.permute.xlu1 %263 }
  0x9c   :  { %v274_v27 = vpop.permute.xlu1 %273 }
  0xd7   :  { %v889_v34 = vpop.f32.mrb[0].mxu0 }
  0xd8   :  { %v199_v35 = vadd.f32 %v889_v34, %v70_v32  ;;  %v193_v36 = vpop.f32.mrb[1].mxu0 }
  0xd9   :  { %v194_v37 = vadd.f32 %v193_v36, %v65_v30  ;;  %v269_v30 = vpop.permute.xlu0 %268  ;;  %v397_v36 = vld [vmem:[%s1259_s4 + $0x8] sm:$0xff] }
  0xda   :  { %v233_v38 = vmax.f32 %v199_v35, 0.0 }
  0xdb   :  { %v232_v39 = vmax.f32 %v194_v37, 0.0  ;;  %v892_v40 = vpop.f32.mrb[2].mxu0 }
  0xdc   :  { %v209_v41 = vadd.f32 %v892_v40, %v80_v33  ;;  %v203_v42 = vpop.f32.mrb[3].mxu0 }
  0xdd   :  { %v204_v44 = vadd.f32 %v203_v42, %v75_v31  ;;  %v961_v45 = vpack.c.bf16 %v233_v38, %v232_v39  ;;  %v398_v38 = vld [vmem:[%s1259_s4 + $0x10] sm:$0xff]  ;;  %v399_v39 = vld [vmem:[%s1259_s4 + $0x18] sm:$0xff] }
  0xde   :  { %v235_v47 = vmax.f32 %v209_v41, 0.0 }
  0xdf   :  { %v234_v48 = vmax.f32 %v204_v44, 0.0  ;;  %v895_v49 = vpop.f32.mrb[4].mxu0  ;;  %962 = vmatprep.subr.bf16.mxu1 %v961_v45 }
  0xe0   :  { %v219_v50 = vadd.f32 %v895_v49, %v90_v43  ;;  %v213_v51 = vpop.f32.mrb[5].mxu0  ;;  %964 = vmatpush3.bf16.msra.mxu1 %v961_v45  ;;  %v408_v49 = vpop.permute.xlu1 %407 }
  0xe1   :  { %v965_v52 = vpack.c.bf16 %v235_v47, %v234_v48  ;;  %v214_v53 = vadd.f32 %v213_v51, %v85_v46  ;;  %v1036_v47 = vmov 0.0|0.0   ;;  %v1038_v48 = vmov 0.0  }
  0xe2   :  { %v237_v54 = vmax.f32 %v219_v50, 0.0  ;;  %v403_v50 = vpop.permute.xlu0 %402 }
  0xe3   :  { %v236_v56 = vmax.f32 %v214_v53, 0.0  ;;  %v898_v57 = vpop.f32.mrb[6].mxu0  ;;  %966 = vmatprep.subr.bf16.mxu1 %v965_v52 }
  0xe4   :  { %v229_v59 = vadd.f32 %v898_v57, %v100_v55  ;;  %v223_v60 = vpop.f32.mrb[7].mxu0  ;;  %968 = vmatpush3.bf16.msra.mxu1 %v965_v52 }
  0xe5   :  { %v969_v61 = vpack.c.bf16 %v237_v54, %v236_v56  ;;  %v224_v62 = vadd.f32 %v223_v60, %v95_v58  ;;  %v418_v56 = vpop.permute.xlu1 %417 }
  0xe6   :  { %v239_v63 = vmax.f32 %v229_v59, 0.0  ;;  %v413_v59 = vpop.permute.xlu0 %412 }
  0xe7   :  { %v238_v0 = vmax.f32 %v224_v62, 0.0  ;;  %970 = vmatprep.subr.bf16.mxu1 %v969_v61 }
  0xe8   :  { %972 = vmatpush3.bf16.msra.mxu1 %v969_v61 }
  0xe9   :  { %v973_v1 = vpack.c.bf16 %v239_v63, %v238_v0 }
  0xeb   :  { %974 = vmatprep.subr.bf16.mxu1 %v973_v1 }
  0xec   :  { %976 = vmatpush3.bf16.msra.mxu1 %v973_v1 }
  0xed   :  { %949 = vmatprep.subr.msk.mxu1 %vm610_vm2, %v34_v2 }
  0xef   :  { %916 = vmatmul.mubr.msk.f32.vlgmr.msra.gmra.mrb[0].mxu1 %vm276_vm1, %v241_v3  ;;  %v522_v3 = vld [vmem:[%s1260_s5] sm:$0xff]  ;;  %s1039_s5 = smov [#allocation2]  }
  0xf0   :  { %918 = vmatprep.mubr.msk.f32.mxu1 %vm276_vm1, %v242_v4  ;;  %950 = vmatpush3.msk.msra.mxu1 %vm610_vm2, %v34_v2  ;;  %v691_v4 = vld [vmem:[%s1262_s7] sm:$0xff]  ;;  %s812_s7 = sshll.u32 %s1039_s5, 4  ;;  %s813_s7 = int_to_ptr.vmem [resolvable:$true] %s812_s7 }
  0xf1   :  { %s1011_s6 = scalar_lea.vmem %s813_s7, 16  ;;  %s1015_s21 = scalar_lea.vmem %s813_s7, 32 }
  0xf2   :  { %p1012_p0 = scmp.ne.s32.totalorder %s813_s7, %s1011_s6  ;;  %p1016_p1 = scmp.lt.s32.totalorder %s813_s7, %s813_s7 }
  0xf3   :  { %919 = vmatmul.mubr.msk.f32.gmra.mrb[2].mxu1 %vm276_vm1, %v243_v5  ;;  %p1017_p2 = scmp.lt.s32.totalorder %s1015_s21, %s1011_s6 }
  0xf4   :  { %921 = vmatprep.mubr.msk.f32.mxu1 %vm276_vm1, %v244_v6 }
  0xf5   :  { %p1018_p3 = por %p1017_p2, %p1016_p1 }
  0xf7   :  { %922 = vmatmul.mubr.msk.f32.gmra.mrb[4].mxu1 %vm276_vm1, %v245_v7  ;;  %p1019_p4 = pnand %p1018_p3, %p1012_p0 }
  0xf8   :  { %951 = vmatprep.mubr.msk.f32.mxu1 %vm603_vm3, %v601_v8 }
  0xfb   :  { %952 = vmatmul.mubr.msk.f32.vlgmr.msra.gmra.mrb[6].mxu1 %vm603_vm3, %v602_v9 }
 0x1c2   :  { %v917_v13 = vpop.f32.mrb[0].mxu1 }
 0x1c3   :  { %v367_v14 = vadd.f32 %v917_v13, %v254_v11  ;;  %v361_v15 = vpop.f32.mrb[1].mxu1 }
 0x1c4   :  { %v362_v17 = vadd.f32 %v361_v15, %v249_v12 }
 0x1c5   :  { %v391_v19 = vmax.f32 %v367_v14, 0.0 }
 0x1c6   :  { %v390_v20 = vmax.f32 %v362_v17, 0.0  ;;  %v920_v21 = vpop.f32.mrb[2].mxu1 }
 0x1c7   :  { %v377_v22 = vadd.f32 %v920_v21, %v264_v16  ;;  %v371_v23 = vpop.f32.mrb[3].mxu1 }
 0x1c8   :  { %v977_v24 = vpack.c.bf16 %v391_v19, %v390_v20  ;;  %v372_v25 = vadd.f32 %v371_v23, %v259_v18 }
 0x1c9   :  { %v393_v26 = vmax.f32 %v377_v22, 0.0 }
 0x1ca   :  { %v392_v28 = vmax.f32 %v372_v25, 0.0  ;;  %v923_v29 = vpop.f32.mrb[4].mxu1  ;;  %978 = vmatprep.subr.bf16.mxu0 %v977_v24 }
 0x1cb   :  { %v387_v31 = vadd.f32 %v923_v29, %v274_v27  ;;  %v381_v32 = vpop.f32.mrb[5].mxu1  ;;  %980 = vmatpush3.bf16.msra.mxu0 %v977_v24 }
 0x1cc   :  { %v981_v33 = vpack.c.bf16 %v393_v26, %v392_v28  ;;  %v382_v34 = vadd.f32 %v381_v32, %v269_v30 }
 0x1cd   :  { %1001 = vtanh.f32 %v387_v31 }
 0x1ce   :  { %1003 = vtanh.f32 %v382_v34  ;;  %982 = vmatprep.subr.bf16.mxu0 %v981_v33  ;;  %v953_v35 = vpop.f32.mrb[6].mxu1  ;;  %v526_v34 = vpop.permute.xlu0 %525 }
 0x1cf   :  { %984 = vmatpush3.bf16.msra.mxu0 %v981_v33  ;;  %v680_v37 = vpop.f32.mrb[7].mxu1 }
 0x1d0   :  { %985 = vmatprep.subr.bf16.mxu0 %v1036_v47 }
 0x1d2   :  { %933 = vmatmul.mubr.msk.f32.vlgmr.msra.gmra.mrb[8].mxu0 %vm420_vm4, %v397_v36 }
 0x1d3   :  { %935 = vmatprep.mubr.msk.f32.mxu0 %vm420_vm4, %v398_v38 }
 0x1d6   :  { %936 = vmatmul.mubr.msk.f32.gmra.mrb[10].mxu0 %vm420_vm4, %v399_v39 }
 0x1d7   :  { %v1002_v40 = vpop.eup %1001  ;;  %946 = vmatprep.mubr.msk.f32.mxu0 %vm1037_vm5, %v1038_v48 }
 0x1d8   :  { %v1004_v41 = vpop.eup %1003  ;;  %v690_v42 = vsub.f32 %v1002_v40, %v953_v35 }
 0x1d9   :  { %v689_v43 = vsub.f32 %v1004_v41, %v680_v37 }
 0x1da   :  { %v693_v44 = vmul.f32 %v690_v42, %v690_v42 }
 0x1db   :  { %v692_v45 = vmul.f32 %v689_v43, %v689_v43 }
 0x1dd   :  { %v992_v46 = vpack.c.bf16 %v693_v44, %v692_v45 }
 0x2a5   :  { %v934_v51 = vpop.f32.mrb[8].mxu0 }
 0x2a6   :  { %v505_v52 = vadd.f32 %v934_v51, %v408_v49  ;;  %v499_v53 = vpop.f32.mrb[9].mxu0 }
 0x2a7   :  { %v500_v54 = vadd.f32 %v499_v53, %v403_v50 }
 0x2a8   :  { %v519_v55 = vmax.f32 %v505_v52, 0.0 }
 0x2a9   :  { %v518_v57 = vmax.f32 %v500_v54, 0.0  ;;  %v937_v58 = vpop.f32.mrb[10].mxu0 }
 0x2aa   :  { %v515_v60 = vadd.f32 %v937_v58, %v418_v56  ;;  %v509_v61 = vpop.f32.mrb[11].mxu0 }
 0x2ab   :  { %v986_v62 = vpack.c.bf16 %v519_v55, %v518_v57  ;;  %v510_v63 = vadd.f32 %v509_v61, %v413_v59 }
 0x2ac   :  { %v521_v0 = vmax.f32 %v515_v60, 0.0 }
 0x2ad   :  { %v520_v1 = vmax.f32 %v510_v63, 0.0  ;;  %987 = vmatpush3.bf16.msra.mxu0 %v986_v62 }
 0x2ae   :  { %988 = vmatprep.subr.bf16.mxu0 %v1036_v47 }
 0x2af   :  { %v989_v2 = vpack.c.bf16 %v521_v0, %v520_v1 }
 0x2b1   :  { %990 = vmatpush3.bf16.msra.mxu0 %v989_v2 }
 0x2b2   :  { %991 = vmatprep.subr.bf16.mxu0 %v1036_v47 }
 0x2b4   :  { %947 = vmatmul.mubr.msk.f32.vlgmr.msra.gmra.mrb[12].mxu0 %vm420_vm4, %v522_v3 }
 0x2b5   :  { %993 = vmatpush3.bf16.msra.mxu0 %v992_v46  ;;  %958 = vmatprep.mubr.msk.f32.mxu0 %vm1037_vm5, %v1038_v48 }
 0x2b8   :  { %959 = vmatmul.mubr.msk.f32.vlgmr.msra.gmra.mrb[14].mxu0 %vm694_vm6, %v691_v4 }
 0x387   :  { %v597_v5 = vpop.f32.mrb[12].mxu0 }
 0x388   :  { %v948_v6 = vpop.f32.mrb[13].mxu0  ;;  %v598_v35 = vadd.f32 %v597_v5, %v526_v34 }
 0x38b   :  { %v764_v7 = vpop.f32.mrb[14].mxu0 }
 0x38c   :  { %v765_v8 = vadd.f32 0.01, %v764_v7  ;;  %v960_v9 = vpop.f32.mrb[15].mxu0 }
 0x38e   :  { %1005 = vrsqrt.f32 %v765_v8  ;;  %vm770_vm7 = vcmp.eq.f32.partialorder %v765_v8, inf  ;;  %v773_v12 = vand.u32 2147483648, %v765_v8  ;;  %vm772_vm8 = vcmp.eq.f32.partialorder %v765_v8, 0.0 }
 0x398   :  { %v1006_v10 = vpop.eup %1005 }
 0x399   :  { %v769_v11 = vmul.f32 %v1006_v10, %v765_v8 }
 0x39b   :  { %v771_v13 = vsel %vm770_vm7, %v765_v8, %v769_v11 }
 0x39c   :  { %v774_v14 = vsel %vm772_vm8, %v773_v12, %v771_v13 }
 0x39d   :  { %v775_v15 = vmul.f32 -1.0, %v774_v14 }
 0x39f   :  { %v777_v16 = vsel %vm776_vm9, %v775_v15, -inf }
 0x3a0   :  { %v778_v17 = vrot.slane %v777_v16, 4 }
 0x3a2   :  { %v779_v18 = vmax.f32 %v777_v16, %v778_v17 }
 0x3a4   :  { %v780_v19 = vrot.slane %v779_v18, 2 }
 0x3a6   :  { %v781_v20 = vmax.f32 %v779_v18, %v780_v19 }
 0x3a8   :  { %v782_v21 = vrot.slane %v781_v20, 1 }
 0x3aa   :  { %v783_v22 = vmax.f32 %v781_v20, %v782_v21 }
 0x3ac   :  { %v784_v23 = vsub.f32 %v775_v15, %v783_v22 }
 0x3ae   :  { %v785_v24 = vmul.f32 1.442695, %v784_v23 }
 0x3b0   :  { %1007 = vpow2.f32 %v785_v24 }
 0x3ba   :  { %v1008_v25 = vpop.eup %1007 }
 0x3bb   :  { %v787_v26 = vsel %vm776_vm9, %v1008_v25, 0.0 }
 0x3bc   :  { %v788_v27 = vrot.slane %v787_v26, 4 }
 0x3be   :  { %v789_v28 = vadd.f32 %v788_v27, %v787_v26 }
 0x3c0   :  { %v790_v29 = vrot.slane %v789_v28, 2 }
 0x3c2   :  { %v791_v30 = vadd.f32 %v790_v29, %v789_v28 }
 0x3c4   :  { %v792_v31 = vrot.slane %v791_v30, 1 }
 0x3c6   :  { %v793_v32 = vadd.f32 %v792_v31, %v791_v30 }
 0x3c8   :  { %1009 = vrcp.f32 %v793_v32 }
 0x3d2   :  { %v1010_v33 = vpop.eup %1009 }
 0x3d3   :  { %v795_v36 = vmul.f32 %v1010_v33, %v1008_v25 }
 0x3d5   :  { %v796_v37 = vmul.f32 %v795_v36, %v598_v35 }
 0x3d7   :  { %v797_v38 = vsel %vm776_vm9, %v796_v37, 0.0 }
 0x3d8   :  { %v798_v39 = vrot.slane %v797_v38, 4 }
 0x3da   :  { %v799_v40 = vadd.f32 %v798_v39, %v797_v38 }
 0x3dc   :  { %v800_v41 = vrot.slane %v799_v40, 2 }
 0x3de   :  { %v801_v42 = vadd.f32 %v800_v41, %v799_v40 }
 0x3e0   :  { %v802_v43 = vrot.slane %v801_v42, 1 }
 0x3e2   :  { %v803_v44 = vadd.f32 %v802_v43, %v801_v42 }
 0x3e4   :  { %805 = vst.msk [vmem:[#allocation2] sm:$0x1] %vm804_vm10, %v803_v44 }
 0x3e5   :  { %1022 = shalt.err (!%p1019_p4)
}
 0x3e6   :  { %s1023_s23 = scalar_lea.hbm %s1264_s9, 16 }
 0x3e7   :  { %p1024_p5 = scmp.ne.s32.totalorder %s1264_s9, %s1023_s23  ;;  %p1027_p6 = scmp.lt.u32.totalorder %s1023_s23, %s1264_s9 }
 0x3e9   :  { %p1029_p7 = pnand %p1027_p6, %p1024_p5 }
 0x3eb   :  { %1032 = shalt.err (!%p1029_p7)
}
 0x3ec   :  { %815 = dma.vmem_to_hbm [thread:$0]  %s813_s7, 16, %s1264_s9, [#allocation3]  }
 0x3ed   :  { %1033 = dma.done.wait [#allocation3], 16  }
 0x3ee   :  { %1034 = vsyncadd [#allocation3], 4294967280 }
 0x3ef   :  { %819 = vsyncpa [#allocation3], 1 }

</bundles_post_ra>
